<compile_context>
chip_gen: v6e
topology: v6e:2x2x1
jax: 0.10.0
libtpu: 0.0.40
codegen_flags: <defaults>
</compile_context>

<pallas_src>
import jax
import jax.numpy as jnp
from jax import lax
from jax.experimental import pallas as pl
from jax.experimental.pallas import tpu as pltpu


def patch_embed_kernel(x_ref, w_ref, pos_ref, o_ref):
    # x_ref:   (tm, D)      patch rows for `g` whole batch elements
    # w_ref:   (E_pad, D)   nn.Linear weight (out, in) -- contracted on dim 1
    # pos_ref: (tm, E_pad)  precomputed (positions[1:] + bias), tiled, f32
    # o_ref:   (tm, E_pad)  aligned output rows (cls row handled in wrapper)
    y = lax.dot_general(
        x_ref[...], w_ref[...],
        dimension_numbers=(((1,), (1,)), ((), ())),   # x @ w.T on the MXU
        preferred_element_type=jnp.float32)
    o_ref[...] = (y + pos_ref[...]).astype(o_ref.dtype)


def patch_embedding(x, weight, bias, cls_token, positions, patch_size,
                    *, rows_per_tile=512, compute_dtype=None):
    """x: (b, c, h, w) NCHW. weight: (emb, patch_dim) like nn.Linear.weight."""
    b, c, h, w = x.shape
    nh, nw = h // patch_size, w // patch_size
    P = nh * nw
    D = patch_size * patch_size * c
    E = weight.shape[0]
    out_dtype = x.dtype

    # einops 'b c (h s1) (w s2) -> b (h w) (s1 s2 c)'  (pure index shuffle).
    # TODO(synk): fuse this NCHW patchify into the kernel (2-D grid over
    # (b, patch-row) + in-VMEM rearrange) to avoid an extra HBM round-trip of
    # the activation when the op is memory-bound at real ViT sizes.
    patches = x.reshape(b, c, nh, patch_size, nw, patch_size)
    patches = patches.transpose(0, 2, 4, 3, 5, 1).reshape(b * P, D)

    w_k = weight
    if compute_dtype is not None:
        patches = patches.astype(compute_dtype)
        w_k = w_k.astype(compute_dtype)

    # Lane-dense output: pad E up to a multiple of 128 (sliced off afterwards).
    E_pad = ((E + 127) // 128) * 128
    if E_pad != E:
        w_k = jnp.pad(w_k, ((0, E_pad - E), (0, 0)))

    # Hoist batch-invariant math out of the kernel (kept in f32).
    pos_bias = positions[1:, :].astype(jnp.float32) + bias.astype(jnp.float32)
    if E_pad != E:
        pos_bias = jnp.pad(pos_bias, ((0, 0), (0, E_pad - E)))

    # M tiling: g whole batch elements per grid step (tm = g * P rows).
    g = max(1, min(b, rows_per_tile // max(P, 1)))
    while b % g:
        g -= 1
    tm = g * P
    grid_m = b // g
    if grid_m > 1 and tm % 8 != 0:          # keep blocks sublane-aligned
        g, tm, grid_m = b, b * P, 1
    pos_tile = jnp.tile(pos_bias, (g, 1)) if g > 1 else pos_bias   # (tm, E_pad)

    out = pl.pallas_call(
        patch_embed_kernel,
        out_shape=jax.ShapeDtypeStruct((b * P, E_pad), out_dtype),
        grid_spec=pltpu.PrefetchScalarGridSpec(
            num_scalar_prefetch=0,
            grid=(grid_m,),
            in_specs=[
                pl.BlockSpec((tm, D), lambda i: (i, 0)),        # activation rows
                pl.BlockSpec((E_pad, D), lambda i: (0, 0)),     # weight (shared)
                pl.BlockSpec((tm, E_pad), lambda i: (0, 0)),    # pos+bias (shared)
            ],
            out_specs=pl.BlockSpec((tm, E_pad), lambda i: (i, 0)),
        ),
        compiler_params=pltpu.CompilerParams(
            dimension_semantics=("parallel",)),
    )(patches, w_k, pos_tile)

    y = out[:, :E] if E_pad != E else out
    y = y.reshape(b, P, E)

    # cls row (batch-invariant): cls_token + positions[0], broadcast over batch.
    cls_row = (cls_token.reshape(1, 1, E).astype(jnp.float32)
               + positions[0, :].astype(jnp.float32)).astype(out_dtype)
    cls = jnp.broadcast_to(cls_row, (b, 1, E))
    return jnp.concatenate([cls, y], axis=1)


def patch_embedding_ref(x, weight, bias, cls_token, positions, patch_size):
    b, c, h, w = x.shape
    nh, nw = h // patch_size, w // patch_size
    P = nh * nw
    D = patch_size * patch_size * c
    E = weight.shape[0]
    patches = x.reshape(b, c, nh, patch_size, nw, patch_size)
    patches = patches.transpose(0, 2, 4, 3, 5, 1).reshape(b, P, D)
    y = patches @ weight.T + bias
    cls = jnp.broadcast_to(cls_token.reshape(1, 1, E), (b, 1, E))
    return jnp.concatenate([cls, y], axis=1) + positions


if __name__ == "__main__":
    # Small, module-consistent shapes: batch=2, in_channels=4, img_size=16,
    # patch_size=4, emb_size=32  ->  patch_dim=64, n_patches=16, seq_len=17.
    b, c, img, ps, emb = 2, 4, 16, 4, 32
    patch_dim = ps * ps * c
    n_patches = (img // ps) ** 2

    key = jax.random.PRNGKey(0)
    kx, kw, kb, kc, kp = jax.random.split(key, 5)
    x = jax.random.normal(kx, (b, c, img, img), dtype=jnp.float32)
    weight = jax.random.normal(kw, (emb, patch_dim), dtype=jnp.float32) * 0.02
    bias = jax.random.normal(kb, (emb,), dtype=jnp.float32) * 0.02
    cls_token = jax.random.normal(kc, (1, 1, emb), dtype=jnp.float32)
    positions = jax.random.normal(kp, (n_patches + 1, emb), dtype=jnp.float32)

    out = patch_embedding(x, weight, bias, cls_token, positions, ps)
    out = jax.block_until_ready(out)

    ref = patch_embedding_ref(x, weight, bias, cls_token, positions, ps)
    assert out.shape == (b, n_patches + 1, emb), out.shape
    assert jnp.allclose(out, ref, atol=1e-4, rtol=1e-4), "mismatch vs reference"
    print("KERNEL_OK")
</pallas_src>

<mosaic_0001>
module attributes {stable_mosaic.version = 11 : i64} {
  func.func @patch_embed_kernel(%arg0: i32, %arg1: memref<32x64xf32, #tpu.memory_space<vmem>>, %arg2: memref<128x64xf32, #tpu.memory_space<vmem>>, %arg3: memref<32x128xf32, #tpu.memory_space<vmem>>, %arg4: memref<32x128xf32, #tpu.memory_space<vmem>>) attributes {dimension_semantics = [#tpu.dimension_semantics<parallel>], iteration_bounds = array<i64: 1>, scalar_prefetch = 0 : i64, scratch_operands = 0 : i64, tpu.core_type = #tpu.core_type<tc>, window_params = [{transform_indices = @transform_0, window_bounds = array<i64: 32, 64>}, {pipeline_mode = #tpu.pipeline_mode<synchronous>, transform_indices = @transform_1, window_bounds = array<i64: 128, 64>}, {pipeline_mode = #tpu.pipeline_mode<synchronous>, transform_indices = @transform_2, window_bounds = array<i64: 32, 128>}, {transform_indices = @transform_3, window_bounds = array<i64: 32, 128>}]} {
    %c0 = arith.constant 0 : index
    %c0_0 = arith.constant 0 : index
    %0 = vector.load %arg1[%c0, %c0_0] : memref<32x64xf32, #tpu.memory_space<vmem>>, vector<32x64xf32>
    %c0_1 = arith.constant 0 : index
    %c0_2 = arith.constant 0 : index
    %1 = vector.load %arg2[%c0_1, %c0_2] : memref<128x64xf32, #tpu.memory_space<vmem>>, vector<128x64xf32>
    %cst = arith.constant dense<0.000000e+00> : vector<32x128xf32>
    %2 = tpu.matmul %0, %1, %cst {dimension_numbers = #tpu.dot_dimension_numbers<[1], [1], [0], [0], [0, 0, 1, 0], [], []>} : vector<32x64xf32>, vector<128x64xf32>, vector<32x128xf32> -> vector<32x128xf32>
    %c0_3 = arith.constant 0 : index
    %c0_4 = arith.constant 0 : index
    %3 = vector.load %arg3[%c0_3, %c0_4] : memref<32x128xf32, #tpu.memory_space<vmem>>, vector<32x128xf32>
    %4 = arith.addf %2, %3 : vector<32x128xf32>
    %c0_5 = arith.constant 0 : index
    %c0_6 = arith.constant 0 : index
    %5 = vector.load %arg4[%c0_5, %c0_6] : memref<32x128xf32, #tpu.memory_space<vmem>>, vector<32x128xf32>
    tpu.vector_store %arg4[%c0_5, %c0_6], %4 {strides = array<i32>} : memref<32x128xf32, #tpu.memory_space<vmem>>, vector<32x128xf32>,
    return
  }
  func.func @transform_0(%arg0: i32) -> (i32, i32) {
    %c0_i32 = arith.constant 0 : i32
    %c0_i32_0 = arith.constant 0 : i32
    return %arg0, %c0_i32 : i32, i32
  }
  func.func @transform_1(%arg0: i32) -> (i32, i32) {
    %c0_i32 = arith.constant 0 : i32
    %c0_i32_0 = arith.constant 0 : i32
    %c0_i32_1 = arith.constant 0 : i32
    return %c0_i32, %c0_i32_0 : i32, i32
  }
  func.func @transform_2(%arg0: i32) -> (i32, i32) {
    %c0_i32 = arith.constant 0 : i32
    %c0_i32_0 = arith.constant 0 : i32
    %c0_i32_1 = arith.constant 0 : i32
    return %c0_i32, %c0_i32_0 : i32, i32
  }
  func.func @transform_3(%arg0: i32) -> (i32, i32) {
    %c0_i32 = arith.constant 0 : i32
    %c0_i32_0 = arith.constant 0 : i32
    return %arg0, %c0_i32 : i32, i32
  }
}

</mosaic_0001>

<bundles_post_ra>
// kernel: tpu_custom_call.1
= control target key start
LH: loop header
LB: loop body
LE: loop exit
PB: predicated region body
PF: predicated region fallthrough
CT: control target
= control target key end

     0   :  { %vm39_vm0 = vcmask 523264   ;;  %s506_s0 = inlined_call_operand.vmem [shape: f32[32,64], index: 0, kind: input, shape index: {}]   ;;  %s507_s1 = inlined_call_operand.vmem [shape: f32[128,64], index: 1, kind: input, shape index: {}]   ;;  %s508_s2 = inlined_call_operand.vmem [shape: f32[32,128], index: 2, kind: input, shape index: {}]   ;;  %s509_s3 = inlined_call_operand.hbm [shape: f32[32,128], index: 3, kind: output, shape index: {}]  }
   0x1   :  { %v34_v0 = vld [vmem:[%s507_s1 + $0x78] sm:$0xff]  ;;  %v33_v1 = vld [vmem:[%s507_s1 + $0x70] sm:$0xff]  ;;  %v32_v2 = vld [vmem:[%s507_s1 + $0x68] sm:$0xff] }
   0x2   :  { %245 = vmatprep.subr.msk.mxu0 %vm39_vm0, %v34_v0  ;;  %283 = vmatprep.subr.msk.mxu1 %vm39_vm0, %v34_v0  ;;  %v15_v3 = vld [vmem:[%s506_s0] sm:$0xff]  ;;  %v17_v4 = vld [vmem:[%s506_s0 + $0x10] sm:$0xff] }
   0x3   :  { %246 = vmatpush3.xpose.msk.msra.mxu0 %vm39_vm0, %v34_v0  ;;  %299 = vmatpush3.xpose.msk.msra.mxu1 %vm39_vm0, %v34_v0 }
   0x4   :  { %247 = vmatprep.subr.msk.mxu0 %vm39_vm0, %v33_v1  ;;  %284 = vmatprep.subr.msk.mxu1 %vm39_vm0, %v33_v1 }
   0x7   :  { %248 = vmatpush3.xpose.msk.msra.mxu0 %vm39_vm0, %v33_v1  ;;  %300 = vmatpush3.xpose.msk.msra.mxu1 %vm39_vm0, %v33_v1 }
   0x8   :  { %249 = vmatprep.subr.msk.mxu0 %vm39_vm0, %v32_v2  ;;  %285 = vmatprep.subr.msk.mxu1 %vm39_vm0, %v32_v2 }
   0x9   :  { %8 = vsyncpa [#allocation3], 0  ;;  %v31_v5 = vld [vmem:[%s507_s1 + $0x60] sm:$0xff]  ;;  %277 = vmatprep.mubr.msk.f32.mxu0 %vm39_vm0, %v15_v3  ;;  %280 = vmatprep.mubr.msk.f32.mxu1 %vm39_vm0, %v17_v4  ;;  %v30_v6 = vld [vmem:[%s507_s1 + $0x58] sm:$0xff]  ;;  %s340_s28 = smov [#allocation2]  }
   0xa   :  { %v29_v7 = vld [vmem:[%s507_s1 + $0x50] sm:$0xff]  ;;  %v28_v8 = vld [vmem:[%s507_s1 + $0x48] sm:$0xff]  ;;  %v27_v9 = vld [vmem:[%s507_s1 + $0x40] sm:$0xff]  ;;  %s194_s29 = sshll.u32 %s340_s28, 4  ;;  %s195_s29 = int_to_ptr.vmem [resolvable:$true] %s194_s29 }
   0xb   :  { %250 = vmatpush3.xpose.msk.msra.mxu0 %vm39_vm0, %v32_v2  ;;  %301 = vmatpush3.xpose.msk.msra.mxu1 %vm39_vm0, %v32_v2  ;;  %v26_v10 = vld [vmem:[%s507_s1 + $0x38] sm:$0xff]  ;;  %v25_v11 = vld [vmem:[%s507_s1 + $0x30] sm:$0xff]  ;;  %v24_v12 = vld [vmem:[%s507_s1 + $0x28] sm:$0xff]  ;;  %s318_s6 = scalar_lea.vmem %s195_s29, 512  ;;  %p323_p1 = scmp.lt.s32.totalorder %s195_s29, %s195_s29 }
   0xc   :  { %251 = vmatprep.subr.msk.mxu0 %vm39_vm0, %v31_v5  ;;  %286 = vmatprep.subr.msk.mxu1 %vm39_vm0, %v31_v5  ;;  %v23_v13 = vld [vmem:[%s507_s1 + $0x20] sm:$0xff]  ;;  %v22_v14 = vld [vmem:[%s507_s1 + $0x18] sm:$0xff]  ;;  %v21_v15 = vld [vmem:[%s507_s1 + $0x10] sm:$0xff]  ;;  %p319_p0 = scmp.ne.s32.totalorder %s195_s29, %s318_s6  ;;  %p324_p2 = scmp.lt.s32.totalorder %s318_s6, %s318_s6 }
   0xd   :  { %v20_v16 = vld [vmem:[%s507_s1 + $0x8] sm:$0xff]  ;;  %v19_v17 = vld [vmem:[%s507_s1] sm:$0xff]  ;;  %v18_v19 = vld [vmem:[%s506_s0 + $0x18] sm:$0xff] }
   0xe   :  { %v16_v18 = vld [vmem:[%s506_s0 + $0x8] sm:$0xff]  ;;  %v38_v21 = vld [vmem:[%s508_s2 + $0x18] sm:$0xff]  ;;  %v35_v24 = vld [vmem:[%s508_s2] sm:$0xff]  ;;  %p325_p3 = por %p324_p2, %p323_p1 }
   0xf   :  { %252 = vmatpush3.xpose.msk.msra.mxu0 %vm39_vm0, %v31_v5  ;;  %302 = vmatpush3.xpose.msk.msra.mxu1 %vm39_vm0, %v31_v5  ;;  %v36_v20 = vld [vmem:[%s508_s2 + $0x8] sm:$0xff]  ;;  %v37_v25 = vld [vmem:[%s508_s2 + $0x10] sm:$0xff] }
  0x10   :  { %253 = vmatprep.subr.msk.mxu0 %vm39_vm0, %v30_v6  ;;  %287 = vmatprep.subr.msk.mxu1 %vm39_vm0, %v30_v6  ;;  %p326_p4 = pnand %p325_p3, %p319_p0 }
  0x13   :  { %254 = vmatpush3.xpose.msk.msra.mxu0 %vm39_vm0, %v30_v6  ;;  %303 = vmatpush3.xpose.msk.msra.mxu1 %vm39_vm0, %v30_v6 }
  0x14   :  { %255 = vmatprep.subr.msk.mxu0 %vm39_vm0, %v29_v7  ;;  %288 = vmatprep.subr.msk.mxu1 %vm39_vm0, %v29_v7 }
  0x17   :  { %256 = vmatpush3.xpose.msk.msra.mxu0 %vm39_vm0, %v29_v7  ;;  %304 = vmatpush3.xpose.msk.msra.mxu1 %vm39_vm0, %v29_v7 }
  0x18   :  { %257 = vmatprep.subr.msk.mxu0 %vm39_vm0, %v28_v8  ;;  %289 = vmatprep.subr.msk.mxu1 %vm39_vm0, %v28_v8 }
  0x1b   :  { %258 = vmatpush3.xpose.msk.msra.mxu0 %vm39_vm0, %v28_v8  ;;  %305 = vmatpush3.xpose.msk.msra.mxu1 %vm39_vm0, %v28_v8 }
  0x1c   :  { %259 = vmatprep.subr.msk.mxu0 %vm39_vm0, %v27_v9  ;;  %290 = vmatprep.subr.msk.mxu1 %vm39_vm0, %v27_v9 }
  0x1f   :  { %260 = vmatpush3.xpose.msk.msra.mxu0 %vm39_vm0, %v27_v9  ;;  %306 = vmatpush3.xpose.msk.msra.mxu1 %vm39_vm0, %v27_v9 }
  0x20   :  { %261 = vmatprep.subr.msk.mxu0 %vm39_vm0, %v26_v10  ;;  %291 = vmatprep.subr.msk.mxu1 %vm39_vm0, %v26_v10 }
  0x23   :  { %262 = vmatpush3.xpose.msk.msra.mxu0 %vm39_vm0, %v26_v10  ;;  %307 = vmatpush3.xpose.msk.msra.mxu1 %vm39_vm0, %v26_v10 }
  0x24   :  { %263 = vmatprep.subr.msk.mxu0 %vm39_vm0, %v25_v11  ;;  %292 = vmatprep.subr.msk.mxu1 %vm39_vm0, %v25_v11 }
  0x27   :  { %264 = vmatpush3.xpose.msk.msra.mxu0 %vm39_vm0, %v25_v11  ;;  %308 = vmatpush3.xpose.msk.msra.mxu1 %vm39_vm0, %v25_v11 }
  0x28   :  { %265 = vmatprep.subr.msk.mxu0 %vm39_vm0, %v24_v12  ;;  %293 = vmatprep.subr.msk.mxu1 %vm39_vm0, %v24_v12 }
  0x2b   :  { %266 = vmatpush3.xpose.msk.msra.mxu0 %vm39_vm0, %v24_v12  ;;  %309 = vmatpush3.xpose.msk.msra.mxu1 %vm39_vm0, %v24_v12 }
  0x2c   :  { %267 = vmatprep.subr.msk.mxu0 %vm39_vm0, %v23_v13  ;;  %294 = vmatprep.subr.msk.mxu1 %vm39_vm0, %v23_v13 }
  0x2f   :  { %268 = vmatpush3.xpose.msk.msra.mxu0 %vm39_vm0, %v23_v13  ;;  %310 = vmatpush3.xpose.msk.msra.mxu1 %vm39_vm0, %v23_v13 }
  0x30   :  { %269 = vmatprep.subr.msk.mxu0 %vm39_vm0, %v22_v14  ;;  %295 = vmatprep.subr.msk.mxu1 %vm39_vm0, %v22_v14 }
  0x33   :  { %270 = vmatpush3.xpose.msk.msra.mxu0 %vm39_vm0, %v22_v14  ;;  %311 = vmatpush3.xpose.msk.msra.mxu1 %vm39_vm0, %v22_v14 }
  0x34   :  { %271 = vmatprep.subr.msk.mxu0 %vm39_vm0, %v21_v15  ;;  %296 = vmatprep.subr.msk.mxu1 %vm39_vm0, %v21_v15 }
  0x37   :  { %272 = vmatpush3.xpose.msk.msra.mxu0 %vm39_vm0, %v21_v15  ;;  %312 = vmatpush3.xpose.msk.msra.mxu1 %vm39_vm0, %v21_v15 }
  0x38   :  { %273 = vmatprep.subr.msk.mxu0 %vm39_vm0, %v20_v16  ;;  %297 = vmatprep.subr.msk.mxu1 %vm39_vm0, %v20_v16 }
  0x3b   :  { %274 = vmatpush3.xpose.msk.msra.mxu0 %vm39_vm0, %v20_v16  ;;  %313 = vmatpush3.xpose.msk.msra.mxu1 %vm39_vm0, %v20_v16 }
  0x3c   :  { %275 = vmatprep.subr.msk.mxu0 %vm39_vm0, %v19_v17  ;;  %298 = vmatprep.subr.msk.mxu1 %vm39_vm0, %v19_v17 }
  0x3f   :  { %276 = vmatpush3.xpose.msk.msra.mxu0 %vm39_vm0, %v19_v17  ;;  %314 = vmatpush3.xpose.msk.msra.mxu1 %vm39_vm0, %v19_v17 }
  0x42   :  { %278 = vmatmul.mubr.msk.f32.vlgmr.msra.gmra.mxu0 %vm39_vm0, %v16_v18  ;;  %281 = vmatmul.mubr.msk.f32.vlgmr.msra.gmra.mxu1 %vm39_vm0, %v18_v19 }
 0x102   :  { %v279_v22 = vpop.f32.mrf.mxu0  ;;  %v282_v23 = vpop.f32.mrf.mxu1 }
 0x103   :  { %v172_v26 = vadd.f32 %v279_v22, %v36_v20  ;;  %v182_v27 = vadd.f32 %v282_v23, %v38_v21 }
 0x104   :  { %v166_v28 = vpop.f32.mrf.mxu0  ;;  %v176_v29 = vpop.f32.mrf.mxu1 }
 0x105   :  { %186 = vst [vmem:[#allocation2 + $0x8] sm:$0xff] %v172_v26  ;;  %188 = vst [vmem:[#allocation2 + $0x18] sm:$0xff] %v182_v27  ;;  %v167_v30 = vadd.f32 %v166_v28, %v35_v24  ;;  %v177_v31 = vadd.f32 %v176_v29, %v37_v25 }
 0x107   :  { %185 = vst [vmem:[#allocation2] sm:$0xff] %v167_v30  ;;  %187 = vst [vmem:[#allocation2 + $0x10] sm:$0xff] %v177_v31 }
 0x108   :  { %329 = shalt.err (!%p326_p4)
}
 0x109   :  { %s341_s7 = smov 128   ;;  %s342_s2 = smov 8  }
 0x10a   :  { %200 = dma.vmem_to_hbm [thread:$0]  %s195_s29, 512, %s509_s3, [#allocation3], %s341_s7, %s341_s7, %s342_s2  }
 0x10b   :  { %338 = dma.done.wait [#allocation3], 512  }
 0x10c   :  { %339 = vsyncadd [#allocation3], 4294966784 }
 0x10d   :  { %204 = vsyncpa [#allocation3], 1 }

</bundles_post_ra>
